<compile_context>
chip_gen: v7x
topology: tpu7x:2x2x1
jax: 0.10.0
libtpu: 0.0.40
codegen_flags: <defaults>
</compile_context>

<pallas_src>
import functools

import jax
import jax.numpy as jnp
from jax.experimental import pallas as pl
from jax.experimental.pallas import tpu as pltpu


def _round_up(x, m):
    return (x + m - 1) // m * m


# ----------------------------------------------------------------------------
# Fused kernel: conv-as-matmul (+BN bias + ReLU) -> GAP -> merged heads matmul.
#
#   A    : [N, HW_pad, K_pad]   im2col patches (bf16, zero-padded K and HW)
#   W    : [K_pad, FEAT_pad]    conv weight folded with BN scale (bf16)
#   b    : [1, FEAT_pad]        folded BN shift (f32)
#   Hall : [FEAT_pad, O_pad]    all heads' Linear weights, concatenated & padded (bf16)
#   feat : [N, 1, FEAT_pad]     features (f32)
#   logit: [N, 1, O_pad]        all-head logits (f32)
#
# grid = (N, HW_pad // t_hw); per-sample GAP accumulator lives in VMEM scratch.
# ----------------------------------------------------------------------------
def _fused_backbone_heads_kernel(a_ref, w_ref, b_ref, hall_ref,
                                 feat_ref, logits_ref, acc_ref,
                                 *, hw, t_hw):
    s = pl.program_id(1)

    @pl.when(s == 0)
    def _init():
        acc_ref[...] = jnp.zeros_like(acc_ref)

    # conv stem tile: [t_hw, K_pad] x [K_pad, FEAT_pad] on the MXU (bf16 in, f32 acc)
    x = jnp.dot(a_ref[...], w_ref[...], preferred_element_type=jnp.float32)
    x = jnp.maximum(x + b_ref[...], 0.0)           # folded-BN bias + ReLU (f32 epilogue)

    # mask spatial padding rows (only emitted when HW is not a multiple of t_hw)
    if hw % t_hw != 0:
        row = jax.lax.broadcasted_iota(jnp.int32, x.shape, 0)
        valid = hw - s * t_hw
        x = jnp.where(row < valid, x, 0.0)

    # global-average-pool accumulation (per sample)
    acc_ref[...] += jnp.sum(x, axis=0, keepdims=True)

    @pl.when(s == pl.num_programs(1) - 1)
    def _finish():
        feat = acc_ref[...] * (1.0 / hw)                         # [1, FEAT_pad] f32
        feat_ref[...] = feat.astype(feat_ref.dtype)
        # all classification heads in one lane-dense matmul
        logits_ref[...] = jnp.dot(
            feat.astype(hall_ref.dtype), hall_ref[...],
            preferred_element_type=jnp.float32).astype(logits_ref.dtype)


def fused_backbone_heads(patches, conv_w, conv_b, heads_w_all, *, hw, t_hw):
    N, hw_pad, k_pad = patches.shape
    _, feat_pad = conv_w.shape
    _, o_pad = heads_w_all.shape
    n_s = hw_pad // t_hw

    kernel = functools.partial(_fused_backbone_heads_kernel, hw=hw, t_hw=t_hw)

    feats3, logits3 = pl.pallas_call(
        kernel,
        out_shape=(
            jax.ShapeDtypeStruct((N, 1, feat_pad), jnp.float32),
            jax.ShapeDtypeStruct((N, 1, o_pad), jnp.float32),
        ),
        grid=(N, n_s),
        in_specs=[
            pl.BlockSpec((None, t_hw, k_pad), lambda n, s: (n, s, 0)),
            pl.BlockSpec((k_pad, feat_pad), lambda n, s: (0, 0)),
            pl.BlockSpec((1, feat_pad), lambda n, s: (0, 0)),
            pl.BlockSpec((feat_pad, o_pad), lambda n, s: (0, 0)),
        ],
        out_specs=(
            pl.BlockSpec((None, 1, feat_pad), lambda n, s: (n, 0, 0)),
            pl.BlockSpec((None, 1, o_pad), lambda n, s: (n, 0, 0)),
        ),
        scratch_shapes=[pltpu.VMEM((1, feat_pad), jnp.float32)],
        compiler_params=pltpu.CompilerParams(
            dimension_semantics=("parallel", "arbitrary")),
    )(patches, conv_w, conv_b, heads_w_all)

    return logits3[:, 0, :], feats3[:, 0, :]


# ----------------------------------------------------------------------------
# Parameter construction (deterministic, synthetic). Weights are pre-folded
# (conv x BN-eval), concatenated across heads, lane-padded and cast to bf16.
# ----------------------------------------------------------------------------
def init_params(key, c_in, feat, head_outs):
    k_conv, k_heads = jax.random.split(key)
    K = 9 * c_in
    k_pad = _round_up(K, 128)
    feat_pad = _round_up(feat, 128)

    conv_w = jax.random.normal(k_conv, (K, feat), jnp.float32) * jnp.sqrt(2.0 / K)
    # eval-mode BatchNorm fold: gamma=1, beta=0, running_mean=0, running_var=1
    eps = 1e-5
    scale = 1.0 / jnp.sqrt(1.0 + eps)
    conv_w_folded = conv_w * scale
    conv_b_folded = jnp.zeros((feat,), jnp.float32)

    conv_w_p = jnp.zeros((k_pad, feat_pad), jnp.float32).at[:K, :feat].set(conv_w_folded)
    conv_b_p = jnp.zeros((1, feat_pad), jnp.float32).at[:, :feat].set(conv_b_folded)

    # heads: nn.Linear(feat, n_out, bias=False), PyTorch default U(+-1/sqrt(feat)),
    # merged into one [feat_pad, O_pad] lane-dense matrix.
    bound = 1.0 / jnp.sqrt(float(feat))
    hkeys = jax.random.split(k_heads, len(head_outs))
    heads = [jax.random.uniform(hk, (feat, n_out), jnp.float32, -bound, bound)
             for hk, n_out in zip(hkeys, head_outs)]
    o_sum = int(sum(head_outs))
    o_pad = _round_up(o_sum, 128)
    heads_all = jnp.zeros((feat_pad, o_pad), jnp.float32)
    heads_all = heads_all.at[:feat, :o_sum].set(jnp.concatenate(heads, axis=-1))

    params = dict(
        conv_w=conv_w_p.astype(jnp.bfloat16),
        conv_b=conv_b_p,                                   # f32 bias for f32 epilogue
        heads_w=heads_all.astype(jnp.bfloat16),
    )
    meta = dict(feat=feat, head_outs=tuple(int(n) for n in head_outs), o_sum=o_sum)
    return params, meta


# ----------------------------------------------------------------------------
# Forward: mirrors BaseModel.forward -> ({head_id: logits}, features)
# ----------------------------------------------------------------------------
@jax.jit
def _forward_jit(x_nchw, conv_w, conv_b, heads_w_all):
    N, c_in, H, W = x_nchw.shape
    HW = H * W
    K = 9 * c_in
    k_pad = conv_w.shape[0]

    # NCHW -> NHWC, then im2col for a 3x3 / stride-1 / pad-1 conv (glue in plain JAX)
    x = jnp.transpose(x_nchw, (0, 2, 3, 1))
    xp = jnp.pad(x, ((0, 0), (1, 1), (1, 1), (0, 0)))
    cols = [xp[:, di:di + H, dj:dj + W, :] for di in range(3) for dj in range(3)]
    patches = jnp.concatenate(cols, axis=-1).reshape(N, HW, K)

    # lane-pad K and feed the MXU bf16
    patches = jnp.pad(patches, ((0, 0), (0, 0), (0, k_pad - K))).astype(jnp.bfloat16)

    # spatial tile: big (fewer grid steps), multiple of 8 sublanes, no divisibility assert
    t_hw = min(_round_up(HW, 8), 512)
    hw_pad = _round_up(HW, t_hw)
    if hw_pad != HW:
        patches = jnp.pad(patches, ((0, 0), (0, hw_pad - HW), (0, 0)))

    logits_all, features_pad = fused_backbone_heads(
        patches, conv_w, conv_b, heads_w_all, hw=HW, t_hw=t_hw)
    return logits_all, features_pad


def base_model_forward(x_nchw, params, meta):
    logits_all, features_pad = _forward_jit(
        x_nchw, params["conv_w"], params["conv_b"], params["heads_w"])
    features = features_pad[:, :meta["feat"]]
    results, off = {}, 0
    for hid, n_out in enumerate(meta["head_outs"]):
        results[hid] = logits_all[:, off:off + n_out]
        off += n_out
    return results, features


# ----------------------------------------------------------------------------
# Pure-JAX reference (f32) for a correctness check of the fused kernel.
# ----------------------------------------------------------------------------
def _reference_forward(x_nchw, params, meta):
    N, c_in, H, W = x_nchw.shape
    conv_w = params["conv_w"].astype(jnp.float32)
    conv_b = params["conv_b"]
    heads_w = params["heads_w"].astype(jnp.float32)
    k_pad = conv_w.shape[0]

    x = jnp.transpose(x_nchw, (0, 2, 3, 1))
    xp = jnp.pad(x, ((0, 0), (1, 1), (1, 1), (0, 0)))
    cols = [xp[:, di:di + H, dj:dj + W, :] for di in range(3) for dj in range(3)]
    patches = jnp.concatenate(cols, axis=-1).reshape(N, H * W, 9 * c_in)
    patches = jnp.pad(patches, ((0, 0), (0, 0), (0, k_pad - 9 * c_in)))
    patches = patches.astype(jnp.bfloat16).astype(jnp.float32)  # match kernel input quant

    conv_out = jnp.maximum(jnp.einsum("nsk,kf->nsf", patches, conv_w) + conv_b, 0.0)
    features_pad = conv_out.mean(axis=1)
    logits_all = features_pad @ heads_w
    return logits_all, features_pad[:, :meta["feat"]]


if __name__ == "__main__":
    key = jax.random.PRNGKey(0)
    k_x, k_p = jax.random.split(key)

    # small CIFAR-like input, NCHW like PyTorch
    N, C_IN, H, W = 2, 3, 16, 16
    FEAT = 128                 # backbone.feature_space_size (stand-in)
    HEAD_OUTS = (10, 10)       # two incrementally-added classification heads

    x = jax.random.normal(k_x, (N, C_IN, H, W), jnp.float32)
    params, meta = init_params(k_p, C_IN, FEAT, HEAD_OUTS)

    results, features = base_model_forward(x, params, meta)
    jax.block_until_ready((results, features))

    # shape checks (results, features) exactly like BaseModel.forward
    assert features.shape == (N, FEAT)
    for hid, n_out in enumerate(HEAD_OUTS):
        assert results[hid].shape == (N, n_out)

    # numerical check vs pure-JAX reference
    ref_logits_all, ref_features = _reference_forward(x, params, meta)
    assert jnp.allclose(features, ref_features, rtol=5e-2, atol=5e-2)
    off = 0
    for hid, n_out in enumerate(HEAD_OUTS):
        assert jnp.allclose(results[hid], ref_logits_all[:, off:off + n_out],
                            rtol=5e-2, atol=5e-2)
        off += n_out

    print("KERNEL_OK")
</pallas_src>

<mosaic_0001>
module attributes {stable_mosaic.version = 11 : i64} {
  func.func @_fused_backbone_heads_kernel(%arg0: i32, %arg1: i32, %arg2: memref<1x256x128xbf16, #tpu.memory_space<vmem>>, %arg3: memref<128x128xbf16, #tpu.memory_space<vmem>>, %arg4: memref<1x128xf32, #tpu.memory_space<vmem>>, %arg5: memref<128x128xbf16, #tpu.memory_space<vmem>>, %arg6: memref<1x1x128xf32, #tpu.memory_space<vmem>>, %arg7: memref<1x1x128xf32, #tpu.memory_space<vmem>>, %arg8: memref<1x128xf32, #tpu.memory_space<vmem>>) attributes {dimension_semantics = [#tpu.dimension_semantics<parallel>, #tpu.dimension_semantics<arbitrary>], iteration_bounds = array<i64: 2, 1>, scalar_prefetch = 0 : i64, scratch_operands = 1 : i64, tpu.core_type = #tpu.core_type<tc>, window_params = [{transform_indices = @transform_0, window_bounds = array<i64: 1, 256, 128>}, {pipeline_mode = #tpu.pipeline_mode<synchronous>, transform_indices = @transform_1, window_bounds = array<i64: 128, 128>}, {pipeline_mode = #tpu.pipeline_mode<synchronous>, transform_indices = @transform_2, window_bounds = array<i64: 1, 128>}, {pipeline_mode = #tpu.pipeline_mode<synchronous>, transform_indices = @transform_3, window_bounds = array<i64: 128, 128>}, {transform_indices = @transform_4, window_bounds = array<i64: 1, 1, 128>}, {transform_indices = @transform_5, window_bounds = array<i64: 1, 1, 128>}]} {
    %c0_i32 = arith.constant 0 : i32
    %0 = arith.cmpi eq, %arg1, %c0_i32 : i32
    %1 = arith.extui %0 : i1 to i32
    %c0_i32_0 = arith.constant 0 : i32
    %2 = arith.cmpi ne, %1, %c0_i32_0 : i32
    scf.if %2 {
      %cst_15 = arith.constant 0.000000e+00 : f32
      %20 = vector.broadcast %cst_15 : f32 to vector<1x128xf32>
      %c0_16 = arith.constant 0 : index
      %c0_17 = arith.constant 0 : index
      %21 = vector.load %arg8[%c0_16, %c0_17] : memref<1x128xf32, #tpu.memory_space<vmem>>, vector<1x128xf32>
      tpu.vector_store %arg8[%c0_16, %c0_17], %20 {strides = array<i32>} : memref<1x128xf32, #tpu.memory_space<vmem>>, vector<1x128xf32>,
    } else {
    }
    %c0 = arith.constant 0 : index
    %c0_1 = arith.constant 0 : index
    %c0_2 = arith.constant 0 : index
    %3 = vector.load %arg2[%c0, %c0_1, %c0_2] : memref<1x256x128xbf16, #tpu.memory_space<vmem>>, vector<1x256x128xbf16>
    %4 = vector.shape_cast %3 : vector<1x256x128xbf16> to vector<256x128xbf16>
    %c0_3 = arith.constant 0 : index
    %c0_4 = arith.constant 0 : index
    %5 = vector.load %arg3[%c0_3, %c0_4] : memref<128x128xbf16, #tpu.memory_space<vmem>>, vector<128x128xbf16>
    %cst = arith.constant dense<0.000000e+00> : vector<256x128xf32>
    %6 = tpu.matmul %4, %5, %cst {dimension_numbers = #tpu.dot_dimension_numbers<[1], [0], [0], [1], [0, 0, 1, 1], [], []>} : vector<256x128xbf16>, vector<128x128xbf16>, vector<256x128xf32> -> vector<256x128xf32>
    %c0_5 = arith.constant 0 : index
    %c0_6 = arith.constant 0 : index
    %7 = vector.load %arg4[%c0_5, %c0_6] : memref<1x128xf32, #tpu.memory_space<vmem>>, vector<1x128xf32>
    %8 = vector.broadcast %7 : vector<1x128xf32> to vector<256x128xf32>
    %9 = arith.addf %6, %8 : vector<256x128xf32>
    %cst_7 = arith.constant 0.000000e+00 : f32
    %10 = vector.broadcast %cst_7 : f32 to vector<256x128xf32>
    %11 = arith.maximumf %9, %10 : vector<256x128xf32>
    %c0_8 = arith.constant 0 : index
    %c0_9 = arith.constant 0 : index
    %12 = vector.load %arg8[%c0_8, %c0_9] : memref<1x128xf32, #tpu.memory_space<vmem>>, vector<1x128xf32>
    %cst_10 = arith.constant dense<0.000000e+00> : vector<128xf32>
    %13 = vector.multi_reduction <add>, %11, %cst_10 [0] : vector<256x128xf32> to vector<128xf32>
    %14 = vector.shape_cast %13 : vector<128xf32> to vector<1x128xf32>
    %15 = arith.addf %12, %14 : vector<1x128xf32>
    %c0_11 = arith.constant 0 : index
    %c0_12 = arith.constant 0 : index
    %16 = vector.load %arg8[%c0_11, %c0_12] : memref<1x128xf32, #tpu.memory_space<vmem>>, vector<1x128xf32>
    tpu.vector_store %arg8[%c0_11, %c0_12], %15 {strides = array<i32>} : memref<1x128xf32, #tpu.memory_space<vmem>>, vector<1x128xf32>,
    %c0_i32_13 = arith.constant 0 : i32
    %17 = arith.cmpi eq, %arg1, %c0_i32_13 : i32
    %18 = arith.extui %17 : i1 to i32
    %c0_i32_14 = arith.constant 0 : i32
    %19 = arith.cmpi ne, %18, %c0_i32_14 : i32
    scf.if %19 {
      %c0_15 = arith.constant 0 : index
      %c0_16 = arith.constant 0 : index
      %20 = vector.load %arg8[%c0_15, %c0_16] : memref<1x128xf32, #tpu.memory_space<vmem>>, vector<1x128xf32>
      %cst_17 = arith.constant 3.906250e-03 : f32
      %21 = vector.broadcast %cst_17 : f32 to vector<1x128xf32>
      %22 = arith.mulf %20, %21 : vector<1x128xf32>
      %c0_18 = arith.constant 0 : index
      %c0_19 = arith.constant 0 : index
      %c0_20 = arith.constant 0 : index
      %23 = vector.load %arg6[%c0_18, %c0_19, %c0_20] : memref<1x1x128xf32, #tpu.memory_space<vmem>>, vector<1x1x128xf32>
      %24 = vector.shape_cast %23 : vector<1x1x128xf32> to vector<1x128xf32>
      %25 = vector.shape_cast %22 : vector<1x128xf32> to vector<1x1x128xf32>
      tpu.vector_store %arg6[%c0_18, %c0_19, %c0_20], %25 {strides = array<i32>} : memref<1x1x128xf32, #tpu.memory_space<vmem>>, vector<1x1x128xf32>,
      %26 = arith.truncf %22 : vector<1x128xf32> to vector<1x128xbf16>
      %c0_21 = arith.constant 0 : index
      %c0_22 = arith.constant 0 : index
      %27 = vector.load %arg5[%c0_21, %c0_22] : memref<128x128xbf16, #tpu.memory_space<vmem>>, vector<128x128xbf16>
      %cst_23 = arith.constant dense<0.000000e+00> : vector<1x128xf32>
      %28 = tpu.matmul %26, %27, %cst_23 {dimension_numbers = #tpu.dot_dimension_numbers<[1], [0], [0], [1], [0, 0, 1, 1], [], []>} : vector<1x128xbf16>, vector<128x128xbf16>, vector<1x128xf32> -> vector<1x128xf32>
      %c0_24 = arith.constant 0 : index
      %c0_25 = arith.constant 0 : index
      %c0_26 = arith.constant 0 : index
      %29 = vector.load %arg7[%c0_24, %c0_25, %c0_26] : memref<1x1x128xf32, #tpu.memory_space<vmem>>, vector<1x1x128xf32>
      %30 = vector.shape_cast %29 : vector<1x1x128xf32> to vector<1x128xf32>
      %31 = vector.shape_cast %28 : vector<1x128xf32> to vector<1x1x128xf32>
      tpu.vector_store %arg7[%c0_24, %c0_25, %c0_26], %31 {strides = array<i32>} : memref<1x1x128xf32, #tpu.memory_space<vmem>>, vector<1x1x128xf32>,
    } else {
    }
    return
  }
  func.func @transform_0(%arg0: i32, %arg1: i32) -> (i32, i32, i32) {
    %c0_i32 = arith.constant 0 : i32
    %c0_i32_0 = arith.constant 0 : i32
    return %arg0, %arg1, %c0_i32 : i32, i32, i32
  }
  func.func @transform_1(%arg0: i32, %arg1: i32) -> (i32, i32) {
    %c0_i32 = arith.constant 0 : i32
    %c0_i32_0 = arith.constant 0 : i32
    %c0_i32_1 = arith.constant 0 : i32
    return %c0_i32, %c0_i32_0 : i32, i32
  }
  func.func @transform_2(%arg0: i32, %arg1: i32) -> (i32, i32) {
    %c0_i32 = arith.constant 0 : i32
    %c0_i32_0 = arith.constant 0 : i32
    %c0_i32_1 = arith.constant 0 : i32
    return %c0_i32, %c0_i32_0 : i32, i32
  }
  func.func @transform_3(%arg0: i32, %arg1: i32) -> (i32, i32) {
    %c0_i32 = arith.constant 0 : i32
    %c0_i32_0 = arith.constant 0 : i32
    %c0_i32_1 = arith.constant 0 : i32
    return %c0_i32, %c0_i32_0 : i32, i32
  }
  func.func @transform_4(%arg0: i32, %arg1: i32) -> (i32, i32, i32) {
    %c0_i32 = arith.constant 0 : i32
    %c0_i32_0 = arith.constant 0 : i32
    %c0_i32_1 = arith.constant 0 : i32
    return %arg0, %c0_i32, %c0_i32_0 : i32, i32, i32
  }
  func.func @transform_5(%arg0: i32, %arg1: i32) -> (i32, i32, i32) {
    %c0_i32 = arith.constant 0 : i32
    %c0_i32_0 = arith.constant 0 : i32
    %c0_i32_1 = arith.constant 0 : i32
    return %arg0, %c0_i32, %c0_i32_0 : i32, i32, i32
  }
}

</mosaic_0001>

<bundles_post_ra>
// kernel: _forward_jit.1
= control target key start
LH: loop header
LB: loop body
LE: loop exit
PB: predicated region body
PF: predicated region fallthrough
CT: control target
= control target key end

     0   :  { %11 = vsyncpa [#allocation4], 0  ;;  %s1570_s0 = inlined_call_operand.vmem [shape: bf16[2,256,128], index: 0, kind: input, shape index: {}]   ;;  %s1571_s1 = inlined_call_operand.vmem [shape: bf16[128,128], index: 1, kind: input, shape index: {}]   ;;  %s1572_s2 = inlined_call_operand.vmem [shape: f32[1,128], index: 2, kind: input, shape index: {}]   ;;  %s1573_s3 = inlined_call_operand.vmem [shape: bf16[128,128], index: 3, kind: input, shape index: {}]   ;;  %s1574_s4 = inlined_call_operand.hbm [shape: f32[2,1,128], index: 4, kind: output, shape index: {0}]   ;;  %s1575_s5 = inlined_call_operand.hbm [shape: f32[2,1,128], index: 5, kind: output, shape index: {1}]  }
   0x1   :  { %13 = vsyncpa [#allocation4 + $0x1], 0 }
   0x2   :  { %14 = vsyncpa [#allocation6], 0 }
   0x3   :  { %16 = vsyncpa [#allocation6 + $0x1], 0  ;;  %s1323_s18 = smov 0   ;;  %s1325_s19 = smov 0  }
   0x4   :  { %s1327_s20 = smov 0   ;;  %s1329_s21 = smov 0  }
   0x5   :  { %s1331_s22 = smov 0   ;;  %s1333_s23 = smov 0  }
   0x6 LB: > { %s937_s24 = sadd.s32 4294967295, %s1287_s23   ;;  %s938_s25 = sadd.s32 4294967294, %s1287_s23   ;;  %s1287_s23 = sphi %s1333_s23, %s22_s23   ;;  %s1283_s22 = sphi %s1331_s22, %s1582_s22   ;;  %s1279_s21 = sphi %s1329_s21, %s1581_s21   ;;  %s1275_s20 = sphi %s1327_s20, %s1580_s20   ;;  %s1271_s19 = sphi %s1325_s19, %s1579_s19   ;;  %s1267_s18 = sphi %s1323_s18, %s1578_s18  }
   0x7   : > { %s34_s26 = sadd.s32 1, %s1283_s22  ;;  %s132_s27 = sadd.s32 1, %s1275_s20 }
   0x8   : > { %p36_p0 = scmp.ge.s32.totalorder %s34_s26, 2  ;;  %p142_p1 = scmp.ne.s32.totalorder %s1275_s20, %s1271_s19 }
   0x9   : > { %p143_p2 = scmp.eq.s32.totalorder %s937_s24, 1  ;;  %p148_p3 = scmp.ne.s32.totalorder %s1271_s19, %s1267_s18 }
   0xa   : > { %s1584_s26 = smov (%p36_p0, %s34_s26), 0  ;;  %p149_p5 = scmp.eq.s32.totalorder %s938_s25, 1 }
   0xb   : > { %p1363_p4 = por %p143_p2, %p142_p1  ;;  %s129_s29 = ssub.s32 %s1283_s22, %s1584_s26 }
   0xc   : > { %p941_p6 = scmp.ge.s32.totalorder %s1287_s23, 1  ;;  %p130_p7 = scmp.eq.s32.totalorder %s129_s29, 0 }
   0xd   : > { %p1370_p8 = por %p149_p5, %p148_p3  ;;  %p215_p9 = scmp.lt.s32.totalorder %s1287_s23, 3 }
   0xe   : > { %s1376_s6 = scalar_select %p130_p7, %s1275_s20, %s132_s27  }
   0xf   : > { %p216_p10 = pnand %p941_p6, %p215_p9 }
  0x10   : > { %v1145_v0 = vld [vmem:[%s1571_s1] sm:$0xff] (!%p216_p10)   ;;  %p251_p11 = scmp.lt.s32.totalorder (!%p216_p10), %s1279_s21, 1  ;;  %v1146_v1 = vld [vmem:[%s1571_s1 + $0x8] sm:$0xff] (!%p216_p10)   ;;  %v1147_v2 = vld [vmem:[%s1571_s1 + $0x10] sm:$0xff] (!%p216_p10)   ;;  %v1289_v24 = vmov (!%p216_p10), 0.0   ;;  %vm1290_vm0 = vmmov (!%p216_p10), 0  }
  0x11   : > { %219 = sbr.rel (%p216_p10) target bundleno = 583 (0x247), region = 36  ;;  %1015 = vmatprep.subr.bf16.mxu0 (!%p216_p10), %v1145_v0  ;;  %v1148_v3 = vld [vmem:[%s1571_s1 + $0x18] sm:$0xff] (!%p216_p10)   ;;  %v1149_v5 = vld [vmem:[%s1571_s1 + $0x20] sm:$0xff] (!%p216_p10)   ;;  %v1150_v6 = vld [vmem:[%s1571_s1 + $0x28] sm:$0xff] (!%p216_p10)   ;;  %265 = vst [vmem:[#allocation2] sm:$0x1] (!%p216_p10), %v1289_v24  ;;  %1063 = vmatprep.subr.bf16.mxu1 (!%p216_p10), %v1289_v24 }
  0x12   : > { %1016 = vmatpush3.bf16.msra.mxu0 (!%p216_p10), %v1145_v0  ;;  %v1151_v7 = vld [vmem:[%s1571_s1 + $0x30] sm:$0xff] (!%p216_p10)   ;;  %v1152_v8 = vld [vmem:[%s1571_s1 + $0x38] sm:$0xff] (!%p216_p10)   ;;  %v1169_v25 = vld [vmem:[%s1573_s3] sm:$0xff] (!%p216_p10)   ;;  %1079 = vmatprep.mubr.msk.bf16.mxu1 (!%p216_p10), %vm1290_vm0, %v1289_v24  ;;  %s1487_s16 = sand.u32 (!%p216_p10), 1, %s1271_s19   ;;  %s977_s25 = sshll.u32 (!%p216_p10), %s1279_s21, 4 }
  0x13   : > { %1017 = vmatprep.subr.bf16.mxu0 (!%p216_p10), %v1146_v1  ;;  %1064 = vmatpush3.bf16.msra.mxu1 (!%p216_p10), %v1169_v25  ;;  %v1170_v26 = vld [vmem:[%s1573_s3 + $0x8] sm:$0xff] (!%p216_p10)   ;;  %v1171_v27 = vld [vmem:[%s1573_s3 + $0x10] sm:$0xff] (!%p216_p10)   ;;  %v1172_v28 = vld [vmem:[%s1573_s3 + $0x18] sm:$0xff] (!%p216_p10)   ;;  %s243_s24 = scalar_lea.vmem (!%p216_p10), [#allocation3], %s1487_s16  ;;  %s1496_s29 = scalar_lea.hbm (!%p216_p10), %s1574_s4, %s977_s25 }
  0x14   : > { %1065 = vmatprep.subr.bf16.mxu1 (!%p216_p10), %v1289_v24  ;;  %v1173_v29 = vld [vmem:[%s1573_s3 + $0x20] sm:$0xff] (!%p216_p10)   ;;  %v1174_v30 = vld [vmem:[%s1573_s3 + $0x28] sm:$0xff] (!%p216_p10)   ;;  %v1175_v31 = vld [vmem:[%s1573_s3 + $0x30] sm:$0xff] (!%p216_p10)   ;;  %s827_s7 = sshll.u32 (!%p216_p10), %s243_s24, 4  ;;  %s811_s8 = scalar_lea.sflag (!%p216_p10), [#allocation4], %s1487_s16  ;;  %s828_s7 = int_to_ptr.vmem [resolvable:$true] %s827_s7 }
  0x15   : > { %v1176_v32 = vld [vmem:[%s1573_s3 + $0x38] sm:$0xff] (!%p216_p10)   ;;  %v1452_v33 = vld [vmem:[%s1572_s2] ss:$0 sm:$0xff] (!%p216_p10)  ;;  %s1177_s9 = scalar_lea.vmem (!%p216_p10), %s828_s7, 16  ;;  %s1291_s10 = smov (!%p216_p10), [#allocation3]  }
  0x16   : > { %1018 = vmatpush3.bf16.msra.mxu0 (!%p216_p10), %v1146_v1  ;;  %p1178_p12 = scmp.ne.s32.totalorder (!%p216_p10), %s828_s7, %s1177_s9 }
  0x17   : > { %1019 = vmatprep.subr.bf16.mxu0 (!%p216_p10), %v1147_v2  ;;  %1066 = vmatpush3.bf16.msra.mxu1 (!%p216_p10), %v1170_v26 }
  0x18   : > { %s252_s11 = scalar_select %p251_p11, %s1279_s21, 1  ;;  %1067 = vmatprep.subr.bf16.mxu1 %v1289_v24 }
  0x19   : > { %p1179_p13 = pnand %p1178_p12, %p1363_p4 }
  0x1a   : > { %s981_s14 = sshll.u32 %s252_s11, 7  ;;  %1020 = vmatpush3.bf16.msra.mxu0 %v1147_v2  ;;  %s1181_s11 = sshll.u32 %s1291_s10, 4  ;;  %s1182_s11 = int_to_ptr.vmem [resolvable:$false] %s1181_s11 }
  0x1b   : > { %s1392_s17 = scalar_lea.vmem %s1570_s0, %s981_s14  ;;  %1021 = vmatprep.subr.bf16.mxu0 %v1148_v3  ;;  %1068 = vmatpush3.bf16.msra.mxu1 %v1171_v27  ;;  %p1180_p0 = pneg %p1179_p13 }
  0x1c   : > { %v1153_v4 = vld [vmem:[%s1392_s17] sm:$0xff]   ;;  %v1154_v9 = vld [vmem:[%s1392_s17 + $0x8] sm:$0xff]   ;;  %v1155_v10 = vld [vmem:[%s1392_s17 + $0x10] sm:$0xff]   ;;  %1069 = vmatprep.subr.bf16.mxu1 %v1289_v24  ;;  %s1183_s12 = scalar_lea.vmem %s1182_s11, 32  ;;  %p1184_p1 = scmp.lt.s32.totalorder %s828_s7, %s1182_s11 }
  0x1d   : > { %1031 = vmatprep.mubr.bf16.mxu0 %v1153_v4  ;;  %v1156_v11 = vld [vmem:[%s1392_s17 + $0x18] sm:$0xff]   ;;  %v1157_v12 = vld [vmem:[%s1392_s17 + $0x20] sm:$0xff]   ;;  %v1158_v13 = vld [vmem:[%s1392_s17 + $0x28] sm:$0xff]   ;;  %p1185_p2 = scmp.lt.s32.totalorder %s1183_s12, %s1177_s9 }
  0x1e   : > { %1022 = vmatpush3.bf16.msra.mxu0 %v1148_v3  ;;  %v1159_v14 = vld [vmem:[%s1392_s17 + $0x30] sm:$0xff]   ;;  %v1160_v15 = vld [vmem:[%s1392_s17 + $0x38] sm:$0xff]   ;;  %v1161_v16 = vld [vmem:[%s1392_s17 + $0x40] sm:$0xff]  }
  0x1f   : > { %1023 = vmatprep.subr.bf16.mxu0 %v1149_v5  ;;  %v1162_v17 = vld [vmem:[%s1392_s17 + $0x48] sm:$0xff]   ;;  %v1163_v18 = vld [vmem:[%s1392_s17 + $0x50] sm:$0xff]   ;;  %v1164_v19 = vld [vmem:[%s1392_s17 + $0x58] sm:$0xff]   ;;  %1070 = vmatpush3.bf16.msra.mxu1 %v1172_v28  ;;  %p1186_p3 = por %p1185_p2, %p1184_p1 }
  0x20   : > { %v1165_v20 = vld [vmem:[%s1392_s17 + $0x60] sm:$0xff]   ;;  %v1166_v21 = vld [vmem:[%s1392_s17 + $0x68] sm:$0xff]   ;;  %v1167_v22 = vld [vmem:[%s1392_s17 + $0x70] sm:$0xff]   ;;  %1071 = vmatprep.subr.bf16.mxu1 %v1289_v24 }
  0x21   : > { %v1168_v23 = vld [vmem:[%s1392_s17 + $0x78] sm:$0xff]   ;;  %p1187_p5 = pnand %p1186_p3, %p1180_p0 }
  0x22   : > { %1024 = vmatpush3.bf16.msra.mxu0 %v1149_v5 }
  0x23   : > { %1025 = vmatprep.subr.bf16.mxu0 %v1150_v6  ;;  %1072 = vmatpush3.bf16.msra.mxu1 %v1173_v29 }
  0x24   : > { %1073 = vmatprep.subr.bf16.mxu1 %v1289_v24 }
  0x26   : > { %1026 = vmatpush3.bf16.msra.mxu0 %v1150_v6 }
  0x27   : > { %1027 = vmatprep.subr.bf16.mxu0 %v1151_v7  ;;  %1074 = vmatpush3.bf16.msra.mxu1 %v1174_v30 }
  0x28   : > { %1075 = vmatprep.subr.bf16.mxu1 %v1289_v24 }
  0x2a   : > { %1028 = vmatpush3.bf16.msra.mxu0 %v1151_v7 }
  0x2b   : > { %1029 = vmatprep.subr.bf16.mxu0 %v1152_v8  ;;  %1076 = vmatpush3.bf16.msra.mxu1 %v1175_v31 }
  0x2c   : > { %1077 = vmatprep.subr.bf16.mxu1 %v1289_v24 }
  0x2e   : > { %1030 = vmatpush3.bf16.msra.mxu0 %v1152_v8 }
  0x2f   : > { %1078 = vmatpush3.bf16.msra.mxu1 %v1176_v32 }
  0x31   : > { %1032 = vmatmul.mubr.bf16.vlgmr.msra.gmra.mrb[0].mxu0 %v1154_v9 }
  0x32   : > { %1035 = vmatprep.mubr.bf16.mxu0 %v1155_v10 }
  0x39   : > { %1036 = vmatmul.mubr.bf16.gmra.mrb[4].mxu0 %v1156_v11 }
  0x3a   : > { %1039 = vmatprep.mubr.bf16.mxu0 %v1157_v12 }
  0x41   : > { %1040 = vmatmul.mubr.bf16.gmra.mrb[8].mxu0 %v1158_v13 }
  0x42   : > { %1043 = vmatprep.mubr.bf16.mxu0 %v1159_v14 }
  0x49   : > { %1044 = vmatmul.mubr.bf16.gmra.mrb[12].mxu0 %v1160_v15 }
  0x4a   : > { %1047 = vmatprep.mubr.bf16.mxu0 %v1161_v16 }
  0x51   : > { %1048 = vmatmul.mubr.bf16.gmra.mrb[16].mxu0 %v1162_v17 }
  0x52   : > { %1051 = vmatprep.mubr.bf16.mxu0 %v1163_v18 }
  0x59   : > { %1052 = vmatmul.mubr.bf16.gmra.mrb[20].mxu0 %v1164_v19 }
  0x5a   : > { %1055 = vmatprep.mubr.bf16.mxu0 %v1165_v20 }
  0x61   : > { %1056 = vmatmul.mubr.bf16.gmra.mrb[24].mxu0 %v1166_v21 }
  0x62   : > { %1059 = vmatprep.mubr.bf16.mxu0 %v1167_v22 }
  0x69   : > { %1060 = vmatmul.mubr.bf16.gmra.mrb[28].mxu0 %v1168_v23 }
 0x104   : > { %v1033_v34 = vpop.f32.mrb[0].mxu0 }
 0x105   : > { %v499_v35 = vpop.f32.mrb[1].mxu0  ;;  %v508_v39 = vadd.f32 %v1033_v34, %v1452_v33 }
 0x106   : > { %v500_v36 = vadd.f32 %v1452_v33, %v499_v35  ;;  %v1034_v37 = vpop.f32.mrb[2].mxu0 }
 0x107   : > { %v502_v38 = vpop.f32.mrb[3].mxu0  ;;  %v511_v42 = vadd.f32 %v1034_v37, %v1452_v33  ;;  %v628_v44 = vmax.f32 %v508_v39, 0.0 }
 0x108   : > { %v503_v40 = vadd.f32 %v1452_v33, %v502_v38  ;;  %v626_v41 = vmax.f32 %v500_v36, 0.0 }
 0x109   : > { %v629_v48 = vmax.f32 %v511_v42, 0.0 }
 0x10a   : > { %v627_v43 = vmax.f32 %v503_v40, 0.0 }
 0x10c   : > { %v659_v45 = vadd.f32 %v627_v43, %v626_v41  ;;  %v1037_v46 = vpop.f32.mrb[4].mxu0 }
 0x10d   : > { %v515_v47 = vpop.f32.mrb[5].mxu0  ;;  %v524_v53 = vadd.f32 %v1037_v46, %v1452_v33 }
 0x10e   : > { %v660_v49 = vadd.f32 %v659_v45, %v628_v44  ;;  %v516_v50 = vadd.f32 %v1452_v33, %v515_v47  ;;  %v1038_v51 = vpop.f32.mrb[6].mxu0 }
 0x10f   : > { %v518_v52 = vpop.f32.mrb[7].mxu0  ;;  %v527_v58 = vadd.f32 %v1038_v51, %v1452_v33  ;;  %v632_v60 = vmax.f32 %v524_v53, 0.0 }
 0x110   : > { %v630_v54 = vmax.f32 %v516_v50, 0.0  ;;  %v661_v55 = vadd.f32 %v660_v49, %v629_v48  ;;  %v519_v56 = vadd.f32 %v1452_v33, %v518_v52 }
 0x111   : > { %v633_v0 = vmax.f32 %v527_v58, 0.0 }
 0x112   : > { %v662_v57 = vadd.f32 %v661_v55, %v630_v54  ;;  %v631_v59 = vmax.f32 %v519_v56, 0.0 }
 0x114   : > { %v663_v61 = vadd.f32 %v662_v57, %v631_v59  ;;  %v1041_v62 = vpop.f32.mrb[8].mxu0 }
 0x115   : > { %v531_v63 = vpop.f32.mrb[9].mxu0  ;;  %v540_v5 = vadd.f32 %v1041_v62, %v1452_v33 }
 0x116   : > { %v664_v1 = vadd.f32 %v663_v61, %v632_v60  ;;  %v532_v2 = vadd.f32 %v1452_v33, %v531_v63  ;;  %v1042_v3 = vpop.f32.mrb[10].mxu0 }
 0x117   : > { %v534_v4 = vpop.f32.mrb[11].mxu0  ;;  %v543_v10 = vadd.f32 %v1042_v3, %v1452_v33  ;;  %v636_v12 = vmax.f32 %v540_v5, 0.0 }
 0x118   : > { %v634_v6 = vmax.f32 %v532_v2, 0.0  ;;  %v665_v7 = vadd.f32 %v664_v1, %v633_v0  ;;  %v535_v8 = vadd.f32 %v1452_v33, %v534_v4 }
 0x119   : > { %v637_v16 = vmax.f32 %v543_v10, 0.0 }
 0x11a   : > { %v666_v9 = vadd.f32 %v665_v7, %v634_v6  ;;  %v635_v11 = vmax.f32 %v535_v8, 0.0 }
 0x11c   : > { %v667_v13 = vadd.f32 %v666_v9, %v635_v11  ;;  %v1045_v14 = vpop.f32.mrb[12].mxu0 }
 0x11d   : > { %v547_v15 = vpop.f32.mrb[13].mxu0  ;;  %v556_v21 = vadd.f32 %v1045_v14, %v1452_v33 }
 0x11e   : > { %v668_v17 = vadd.f32 %v667_v13, %v636_v12  ;;  %v548_v18 = vadd.f32 %v1452_v33, %v547_v15  ;;  %v1046_v19 = vpop.f32.mrb[14].mxu0 }
 0x11f   : > { %v550_v20 = vpop.f32.mrb[15].mxu0  ;;  %v559_v26 = vadd.f32 %v1046_v19, %v1452_v33  ;;  %v640_v28 = vmax.f32 %v556_v21, 0.0 }
 0x120   : > { %v638_v22 = vmax.f32 %v548_v18, 0.0  ;;  %v669_v23 = vadd.f32 %v668_v17, %v637_v16  ;;  %v551_v24 = vadd.f32 %v1452_v33, %v550_v20 }
 0x121   : > { %v641_v32 = vmax.f32 %v559_v26, 0.0 }
 0x122   : > { %v670_v25 = vadd.f32 %v669_v23, %v638_v22  ;;  %v639_v27 = vmax.f32 %v551_v24, 0.0 }
 0x124   : > { %v671_v29 = vadd.f32 %v670_v25, %v639_v27  ;;  %v1049_v30 = vpop.f32.mrb[16].mxu0 }
 0x125   : > { %v563_v31 = vpop.f32.mrb[17].mxu0  ;;  %v572_v38 = vadd.f32 %v1049_v30, %v1452_v33 }
 0x126   : > { %v672_v34 = vadd.f32 %v671_v29, %v640_v28  ;;  %v564_v35 = vadd.f32 %v1452_v33, %v563_v31  ;;  %v1050_v36 = vpop.f32.mrb[18].mxu0 }
 0x127   : > { %v566_v37 = vpop.f32.mrb[19].mxu0  ;;  %v575_v43 = vadd.f32 %v1050_v36, %v1452_v33  ;;  %v644_v45 = vmax.f32 %v572_v38, 0.0 }
 0x128   : > { %v642_v39 = vmax.f32 %v564_v35, 0.0  ;;  %v673_v40 = vadd.f32 %v672_v34, %v641_v32  ;;  %v567_v41 = vadd.f32 %v1452_v33, %v566_v37 }
 0x129   : > { %v645_v49 = vmax.f32 %v575_v43, 0.0 }
 0x12a   : > { %v674_v42 = vadd.f32 %v673_v40, %v642_v39  ;;  %v643_v44 = vmax.f32 %v567_v41, 0.0  ;;  %v658_v40 = vld [vmem:[#allocation2] sm:$0x1] }
 0x12c   : > { %v675_v46 = vadd.f32 %v674_v42, %v643_v44  ;;  %v1053_v47 = vpop.f32.mrb[20].mxu0 }
 0x12d   : > { %v579_v48 = vpop.f32.mrb[21].mxu0  ;;  %v588_v54 = vadd.f32 %v1053_v47, %v1452_v33 }
 0x12e   : > { %v676_v50 = vadd.f32 %v675_v46, %v644_v45  ;;  %v580_v51 = vadd.f32 %v1452_v33, %v579_v48  ;;  %v1054_v52 = vpop.f32.mrb[22].mxu0 }
 0x12f   : > { %v582_v53 = vpop.f32.mrb[23].mxu0  ;;  %v591_v59 = vadd.f32 %v1054_v52, %v1452_v33  ;;  %v648_v61 = vmax.f32 %v588_v54, 0.0 }
 0x130   : > { %v646_v55 = vmax.f32 %v580_v51, 0.0  ;;  %v677_v56 = vadd.f32 %v676_v50, %v645_v49  ;;  %v583_v57 = vadd.f32 %v1452_v33, %v582_v53 }
 0x131   : > { %v649_v1 = vmax.f32 %v591_v59, 0.0 }
 0x132   : > { %v678_v58 = vadd.f32 %v677_v56, %v646_v55  ;;  %v647_v60 = vmax.f32 %v583_v57, 0.0 }
 0x134   : > { %v679_v62 = vadd.f32 %v678_v58, %v647_v60  ;;  %v1057_v63 = vpop.f32.mrb[24].mxu0 }
 0x135   : > { %v595_v0 = vpop.f32.mrb[25].mxu0  ;;  %v604_v6 = vadd.f32 %v1057_v63, %v1452_v33 }
 0x136   : > { %v680_v2 = vadd.f32 %v679_v62, %v648_v61  ;;  %v596_v3 = vadd.f32 %v1452_v33, %v595_v0  ;;  %v1058_v4 = vpop.f32.mrb[26].mxu0 }
 0x137   : > { %v598_v5 = vpop.f32.mrb[27].mxu0  ;;  %v607_v11 = vadd.f32 %v1058_v4, %v1452_v33  ;;  %v652_v13 = vmax.f32 %v604_v6, 0.0 }
 0x138   : > { %v650_v7 = vmax.f32 %v596_v3, 0.0  ;;  %v681_v8 = vadd.f32 %v680_v2, %v649_v1  ;;  %v599_v9 = vadd.f32 %v1452_v33, %v598_v5 }
 0x139   : > { %v653_v17 = vmax.f32 %v607_v11, 0.0 }
 0x13a   : > { %v682_v10 = vadd.f32 %v681_v8, %v650_v7  ;;  %v651_v12 = vmax.f32 %v599_v9, 0.0 }
 0x13c   : > { %v683_v14 = vadd.f32 %v682_v10, %v651_v12  ;;  %v1061_v15 = vpop.f32.mrb[28].mxu0 }
 0x13d   : > { %v611_v16 = vpop.f32.mrb[29].mxu0  ;;  %v620_v22 = vadd.f32 %v1061_v15, %v1452_v33 }
 0x13e   : > { %v684_v18 = vadd.f32 %v683_v14, %v652_v13  ;;  %v612_v19 = vadd.f32 %v1452_v33, %v611_v16  ;;  %v1062_v20 = vpop.f32.mrb[30].mxu0 }
 0x13f   : > { %v614_v21 = vpop.f32.mrb[31].mxu0  ;;  %v623_v27 = vadd.f32 %v1062_v20, %v1452_v33  ;;  %v656_v29 = vmax.f32 %v620_v22, 0.0 }
 0x140   : > { %v654_v23 = vmax.f32 %v612_v19, 0.0  ;;  %v685_v24 = vadd.f32 %v684_v18, %v653_v17  ;;  %v615_v25 = vadd.f32 %v1452_v33, %v614_v21 }
 0x141   : > { %v657_v31 = vmax.f32 %v623_v27, 0.0 }
 0x142   : > { %v686_v26 = vadd.f32 %v685_v24, %v654_v23  ;;  %v655_v28 = vmax.f32 %v615_v25, 0.0 }
 0x144   : > { %v687_v30 = vadd.f32 %v686_v26, %v655_v28 }
 0x146   : > { %v688_v32 = vadd.f32 %v687_v30, %v656_v29 }
 0x148   : > { %v689_v34 = vadd.f32 %v688_v32, %v657_v31 }
 0x14a   : > { %v690_v35 = vrot.slane %v689_v34, 4 }
 0x14c   : > { %v691_v36 = vadd.f32 %v690_v35, %v689_v34 }
 0x14e   : > { %v692_v37 = vrot.slane %v691_v36, 2 }
 0x150   : > { %v693_v38 = vadd.f32 %v692_v37, %v691_v36 }
 0x152   : > { %v694_v39 = vrot.slane %v693_v38, 1 }
 0x154   : > { %v695_v41 = vadd.f32 %v694_v39, %v693_v38 }
 0x156   : > { %v696_v42 = vadd.f32 %v695_v41, %v658_v40 }
 0x158   : > { %697 = vst [vmem:[#allocation2] sm:$0x1] %v696_v42 }
 0x15f   : > { %v701_v33 = vld [vmem:[#allocation2] sm:$0x1] }
 0x160   : > { %v702_v43 = vmul.f32 0.00390625, %v701_v33 }
 0x162   : > { %v704_v44 = vpack.c.bf16 %v702_v43, %v702_v43  ;;  %703 = vst [vmem:[%s243_s24] sm:$0x1] %v702_v43 }
 0x164   : > { %1080 = vmatmul.mubr.bf16.vlgmr.msra.gmra.mrb[0].mxu1 %v704_v44 }
 0x165   : > { %1190 = shalt.err (!%p1187_p5)
}
 0x166   : > { %s1191_s13 = scalar_lea.hbm %s1496_s29, 16  ;;  %s1195_s24 = scalar_lea.hbm %s1574_s4, 32 }
 0x167   : > { %p1192_p6 = scmp.ne.s32.totalorder %s1496_s29, %s1191_s13  ;;  %p1196_p10 = scmp.lt.u32.totalorder %s1496_s29, %s1574_s4 }
 0x168   : > { %p1197_p11 = scmp.lt.u32.totalorder %s1195_s24, %s1191_s13  ;;  %p1199_p13 = scmp.lt.u32.totalorder %s1191_s13, %s1496_s29 }
 0x169   : > { %p1193_p7 = pnand %p1192_p6, %p1363_p4 }
 0x16a   : > { %p1198_p12 = por %p1197_p11, %p1196_p10 }
 0x16b   : > { %p1194_p9 = pneg %p1193_p7 }
 0x16c   : > { %p1200_p0 = por %p1199_p13, %p1198_p12 }
 0x16e   : > { %p1201_p1 = pnand %p1200_p0, %p1194_p9 }
 0x170   : > { %1204 = shalt.err (!%p1201_p1)
}
 0x171   : > { %1083 = dma.vmem_to_hbm [thread:$0]  (%p1363_p4), %s828_s7, 16, %s1496_s29, %s811_s8  }
 0x172   : > { %s249_s9 = scalar_lea.vmem [#allocation5], %s1487_s16  ;;  %s1524_s13 = scalar_lea.hbm %s1575_s5, %s977_s25 }
 0x173   : > { %s840_s10 = sshll.u32 %s249_s9, 4  ;;  %s815_s14 = scalar_lea.sflag [#allocation6], %s1487_s16  ;;  %s1517_s10 = int_to_ptr.vmem [resolvable:$true] %s840_s10 }
 0x174   : > { %s1205_s15 = scalar_lea.vmem %s1517_s10, 16  ;;  %s1292_s29 = smov [#allocation5]  }
 0x175   : > { %p1206_p2 = scmp.ne.s32.totalorder %s1517_s10, %s1205_s15  ;;  %s1209_s21 = sshll.u32 %s1292_s29, 4  ;;  %s1210_s21 = int_to_ptr.vmem [resolvable:$false] %s1209_s21 }
 0x176   : > { %s1211_s7 = scalar_lea.vmem %s1210_s21, 32  ;;  %p1212_p6 = scmp.lt.s32.totalorder %s1517_s10, %s1210_s21 }
 0x177   : > { %p1207_p3 = pnand %p1206_p2, %p1363_p4  ;;  %p1213_p7 = scmp.lt.s32.totalorder %s1211_s7, %s1205_s15 }
 0x179   : > { %p1208_p5 = pneg %p1207_p3  ;;  %p1214_p9 = por %p1213_p7, %p1212_p6 }
 0x17b   : > { %p1215_p10 = pnand %p1214_p9, %p1208_p5 }
 0x237   : > { %v803_v45 = vpop.f32.mrb[0].mxu1 }
 0x238   : > { %809 = vst [vmem:[%s249_s9] sm:$0x1] %v803_v45  ;;  %v1081_v46 = vpop.f32.mrb[1].mxu1 }
 0x239   : > { %v806_v47 = vpop.f32.mrb[2].mxu1 }
 0x23a   : > { %1218 = shalt.err (!%p1215_p10)
}
 0x23b   : > { %s1219_s16 = scalar_lea.hbm %s1524_s13, 16  ;;  %s1223_s24 = scalar_lea.hbm %s1575_s5, 32 }
 0x23c   : > { %p1220_p11 = scmp.ne.s32.totalorder %s1524_s13, %s1219_s16  ;;  %p1224_p0 = scmp.lt.u32.totalorder %s1524_s13, %s1575_s5 }
 0x23d   : > { %p1225_p1 = scmp.lt.u32.totalorder %s1223_s24, %s1219_s16  ;;  %p1227_p3 = scmp.lt.u32.totalorder %s1219_s16, %s1524_s13 }
 0x23e   : > { %p1221_p12 = pnand %p1220_p11, %p1363_p4 }
 0x23f   : > { %p1226_p2 = por %p1225_p1, %p1224_p0 }
 0x240   : > { %p1222_p13 = pneg %p1221_p12 }
 0x241   : > { %p1228_p5 = por %p1227_p3, %p1226_p2 }
 0x243   : > { %p1229_p6 = pnand %p1228_p5, %p1222_p13 }
 0x245   : > { %1232 = shalt.err (!%p1229_p6)
}
 0x246   : > { %1084 = dma.vmem_to_hbm [thread:$0]  (%p1363_p4), %s1517_s10, 16, %s1524_s13, %s815_s14   ;;  %v1082_v48 = vpop.f32.mrb[3].mxu1 }
 0x247 PF: > { %p1094_p7 = scmp.ge.s32.totalorder %s1287_s23, 2  ;;  %s852_s9 = sand.u32 1, %s1267_s18  }
 0x248   : > { %s853_s11 = scalar_lea.sflag [#allocation4], %s852_s9 }
 0x249   : > { %p1088_p9 = pnand %p1094_p7, %p1370_p8 }
 0x24b   : > { %1258 = dma.done.wait (!%p1088_p9), %s853_s11, 16  }
 0x24c   : > { %1260 = vsyncadd (!%p1088_p9), %s853_s11, 4294967280  ;;  %s861_s12 = scalar_lea.sflag [#allocation6], %s852_s9 }
 0x24d   : > { %1262 = dma.done.wait (!%p1088_p9), %s861_s12, 16  }
 0x24e   : > { %1264 = vsyncadd (!%p1088_p9), %s861_s12, 4294967280  ;;  %s22_s23 = sadd.s32 1, %s1287_s23   ;;  %s1578_s18 = smov %s1271_s19 }
 0x24f   : > { %p19_p10 = scmp.ge.s32.totalorder %s22_s23, 4   ;;  %s1579_s19 = smov %s1275_s20 }
 0x250   : > { %s1580_s20 = smov %s1376_s6  ;;  %s1581_s21 = smov %s1283_s22 }
 0x251   : > { %s1582_s22 = smov %s1584_s26  ;;  %21 = sbr.rel (!%p19_p10) target bundleno = 6 (0x6), region = 96 }
 0x258   :  { %865 = vsyncpa [#allocation4], 1 }
 0x259   :  { %867 = vsyncpa [#allocation4 + $0x1], 1 }
 0x25a   :  { %868 = vsyncpa [#allocation6], 1 }
 0x25b   :  { %870 = vsyncpa [#allocation6 + $0x1], 1 }

</bundles_post_ra>
